<compile_context>
chip_gen: v6e
topology: v6e:2x2x1
jax: 0.10.0
libtpu: 0.0.40
codegen_flags: <defaults>
</compile_context>

<pallas_src>
import functools

import jax
import jax.numpy as jnp
from jax.experimental import pallas as pl
from jax.experimental.pallas import tpu as pltpu

EPS = 1e-5


def _patch_embed_ln_kernel(x_ref, w_ref, b_ref, o_ref, *, inv_c):
    """LayerNorm over channels, computed in the pre-transpose (C, T) layout.

    x_ref: (1, C, T)  channel-major slab straight from the contiguous NCHW input.
    w_ref, b_ref: (C, 1) LayerNorm affine params (lane-broadcast once).
    o_ref: (1, T, C)  token-major output (lane dim = embed_dim).

    Edge tiles: padded/garbage token columns produce garbage per-column stats,
    but those outputs are discarded by Pallas' masked writeback -- do not
    "optimize" this into an unmasked store.
    """
    x = x_ref[0]                                            # (C, T), input dtype
    xf = x.astype(jnp.float32)
    # Channel reduction along the sublane axis: cheap VPU vreg-adds, no XLU.
    mu = jnp.sum(xf, axis=0, keepdims=True) * inv_c         # (1, T)
    xc = xf - mu                                            # (C, T)
    var = jnp.sum(xc * xc, axis=0, keepdims=True) * inv_c   # (1, T) two-pass
    inv = jax.lax.rsqrt(var + EPS)                          # (1, T)  EUP slot
    w = w_ref[...].astype(jnp.float32)                      # (C, 1)
    b = b_ref[...].astype(jnp.float32)                      # (C, 1)
    y = (xc * (inv * w) + b).astype(o_ref.dtype)            # (C, T)
    # Single unavoidable XLU transpose, on the finished (output-dtype) tile.
    o_ref[0] = jnp.transpose(y)                             # (T, C)


def _vmem_capacity_bytes():
    """Per-core VMEM capacity; falls back to the smallest (v7x, 64 MiB)."""
    try:
        cap = getattr(pltpu.get_tpu_info(), "vmem_capacity_bytes", None)
        if cap:
            return int(cap)
    except Exception:
        pass
    return 64 * 1024 * 1024


def _choose_tile_tok(n_tok, batch, c, itemsize, vmem_cap):
    """Pick a token-tile size.

    - Full axis for small token counts (block == full dim is always legal).
    - Otherwise a multiple of 128 lanes, >= 512 so the (1, C, tile) input
      block's C strided HBM segments stay long (tiny tiles degrade the
      bandwidth-bound input DMA), capped at 4096 (tile sweeps plateau) and at
      a VMEM budget derived from the chip's actual capacity.
    - Aim for >= 4 total grid steps so both v7x TensorCores get >= 2 steps
      and the BlockSpec double-buffer actually overlaps DMA with compute.
    """
    if n_tok <= 512:
        return n_tok
    budget = max(8 * 1024 * 1024, vmem_cap // 3)
    # double-buffered in + out blocks plus ~16 B of f32 temporaries per
    # (token, channel) element live inside the kernel.
    per_tok_bytes = c * (4 * itemsize + 16)
    tile = min(4096, budget // per_tok_bytes, n_tok)
    want_steps = pl.cdiv(4, batch)            # >= 2 steps per v7x core
    if n_tok // want_steps >= 512:
        tile = min(tile, n_tok // want_steps)
    tile = max(512, (tile // 128) * 128)
    return min(tile, n_tok)


def patch_embed_forward(x_nchw, norm_weight=None, norm_bias=None, tile_tok=None):
    """SwinIR PatchEmbed.forward.

    x_nchw: (B, C, H, W) with C == embed_dim.
    Returns (B, H*W, C); applies LayerNorm over C when norm_weight is given.
    """
    B, C, H, W = x_nchw.shape
    n_tok = H * W
    x = x_nchw.reshape(B, C, n_tok)  # free reshape of contiguous NCHW data

    if norm_weight is None:
        # norm_layer=None: pure layout glue, no compute -> leave to XLA.
        return jnp.transpose(x, (0, 2, 1))
    if norm_bias is None:
        norm_bias = jnp.zeros((C,), dtype=norm_weight.dtype)

    vmem_cap = _vmem_capacity_bytes()
    if tile_tok is None:
        tile_tok = _choose_tile_tok(n_tok, B, C, x.dtype.itemsize, vmem_cap)
    grid = (B, pl.cdiv(n_tok, tile_tok))

    kernel = functools.partial(_patch_embed_ln_kernel, inv_c=1.0 / C)
    out = pl.pallas_call(
        kernel,
        out_shape=jax.ShapeDtypeStruct((B, n_tok, C), x.dtype),
        grid_spec=pltpu.PrefetchScalarGridSpec(
            num_scalar_prefetch=0,
            grid=grid,
            in_specs=[
                pl.BlockSpec((1, C, tile_tok), lambda b, t: (b, 0, t)),
                pl.BlockSpec((C, 1), lambda b, t: (0, 0)),
                pl.BlockSpec((C, 1), lambda b, t: (0, 0)),
            ],
            out_specs=pl.BlockSpec((1, tile_tok, C), lambda b, t: (b, t, 0)),
        ),
        compiler_params=pltpu.CompilerParams(
            dimension_semantics=("parallel", "parallel"),
            vmem_limit_bytes=min(int(vmem_cap * 3 // 4), 128 * 1024 * 1024),
        ),
    )(x, norm_weight.reshape(C, 1), norm_bias.reshape(C, 1))
    return out


def _reference(x_nchw, norm_weight, norm_bias):
    B, C, H, W = x_nchw.shape
    x = jnp.transpose(x_nchw.reshape(B, C, H * W), (0, 2, 1)).astype(jnp.float32)
    mu = jnp.mean(x, axis=-1, keepdims=True)
    var = jnp.mean((x - mu) ** 2, axis=-1, keepdims=True)
    return (x - mu) * jax.lax.rsqrt(var + EPS) * norm_weight + norm_bias


if __name__ == "__main__":
    key = jax.random.PRNGKey(0)
    kx, kw, kb, kx2, kx3 = jax.random.split(key, 5)

    # Module-consistent small shapes: embed_dim=96 channels, 16x16 patch grid.
    B, C, H, W = 2, 96, 16, 16
    x = jax.random.normal(kx, (B, C, H, W), dtype=jnp.float32)
    norm_weight = 1.0 + 0.01 * jax.random.normal(kw, (C,), dtype=jnp.float32)
    norm_bias = 0.01 * jax.random.normal(kb, (C,), dtype=jnp.float32)

    out = jax.block_until_ready(patch_embed_forward(x, norm_weight, norm_bias))
    ref = _reference(x, norm_weight, norm_bias)
    assert out.shape == (B, H * W, C)
    assert jnp.allclose(out, ref, atol=2e-5, rtol=1e-5)

    # Non-divisible token count: exercises the cdiv grid + masked edge block.
    H2, W2 = 15, 20  # 300 tokens, not a multiple of 128
    x2 = jax.random.normal(kx2, (B, C, H2, W2), dtype=jnp.float32)
    out2 = jax.block_until_ready(
        patch_embed_forward(x2, norm_weight, norm_bias, tile_tok=256))
    ref2 = _reference(x2, norm_weight, norm_bias)
    assert out2.shape == (B, H2 * W2, C)
    assert jnp.allclose(out2, ref2, atol=2e-5, rtol=1e-5)

    # bf16 path (production activations): exercises the automatic tile chooser
    # (2304 tokens -> 2 token tiles per batch, 4 grid steps) and bf16 layout.
    H3, W3 = 48, 48
    x3 = jax.random.normal(kx3, (B, C, H3, W3), dtype=jnp.float32).astype(jnp.bfloat16)
    out3 = jax.block_until_ready(patch_embed_forward(x3, norm_weight, norm_bias))
    ref3 = _reference(x3.astype(jnp.float32), norm_weight, norm_bias)
    assert out3.shape == (B, H3 * W3, C)
    assert out3.dtype == jnp.bfloat16
    assert jnp.allclose(out3.astype(jnp.float32), ref3, atol=5e-2, rtol=5e-2)

    # norm_layer=None path (pure layout, no kernel).
    out4 = jax.block_until_ready(patch_embed_forward(x))
    assert out4.shape == (B, H * W, C)
    assert jnp.allclose(out4, jnp.transpose(x.reshape(B, C, H * W), (0, 2, 1)))

    print("KERNEL_OK")
</pallas_src>

<mosaic_0001>
module attributes {stable_mosaic.version = 11 : i64} {
  func.func @_patch_embed_ln_kernel(%arg0: i32, %arg1: i32, %arg2: memref<1x96x256xf32, #tpu.memory_space<vmem>>, %arg3: memref<96x1xf32, #tpu.memory_space<vmem>>, %arg4: memref<96x1xf32, #tpu.memory_space<vmem>>, %arg5: memref<1x256x96xf32, #tpu.memory_space<vmem>>) attributes {dimension_semantics = [#tpu.dimension_semantics<parallel>, #tpu.dimension_semantics<parallel>], iteration_bounds = array<i64: 2, 1>, scalar_prefetch = 0 : i64, scratch_operands = 0 : i64, tpu.core_type = #tpu.core_type<tc>, window_params = [{transform_indices = @transform_0, window_bounds = array<i64: 1, 96, 256>}, {pipeline_mode = #tpu.pipeline_mode<synchronous>, transform_indices = @transform_1, window_bounds = array<i64: 96, 1>}, {pipeline_mode = #tpu.pipeline_mode<synchronous>, transform_indices = @transform_2, window_bounds = array<i64: 96, 1>}, {transform_indices = @transform_3, window_bounds = array<i64: 1, 256, 96>}]} {
    %c0 = arith.constant 0 : index
    %c0_0 = arith.constant 0 : index
    %c0_1 = arith.constant 0 : index
    %0 = vector.load %arg2[%c0, %c0_0, %c0_1] : memref<1x96x256xf32, #tpu.memory_space<vmem>>, vector<1x96x256xf32>
    %1 = vector.shape_cast %0 : vector<1x96x256xf32> to vector<96x256xf32>
    %cst = arith.constant dense<0.000000e+00> : vector<256xf32>
    %2 = vector.multi_reduction <add>, %1, %cst [0] : vector<96x256xf32> to vector<256xf32>
    %3 = vector.shape_cast %2 : vector<256xf32> to vector<1x256xf32>
    %cst_2 = arith.constant 0.010416667 : f32
    %4 = vector.broadcast %cst_2 : f32 to vector<1x256xf32>
    %5 = arith.mulf %3, %4 : vector<1x256xf32>
    %6 = vector.broadcast %5 : vector<1x256xf32> to vector<96x256xf32>
    %7 = arith.subf %1, %6 : vector<96x256xf32>
    %8 = arith.mulf %7, %7 : vector<96x256xf32>
    %cst_3 = arith.constant dense<0.000000e+00> : vector<256xf32>
    %9 = vector.multi_reduction <add>, %8, %cst_3 [0] : vector<96x256xf32> to vector<256xf32>
    %10 = vector.shape_cast %9 : vector<256xf32> to vector<1x256xf32>
    %cst_4 = arith.constant 0.010416667 : f32
    %11 = vector.broadcast %cst_4 : f32 to vector<1x256xf32>
    %12 = arith.mulf %10, %11 : vector<1x256xf32>
    %cst_5 = arith.constant 9.99999974E-6 : f32
    %13 = vector.broadcast %cst_5 : f32 to vector<1x256xf32>
    %14 = arith.addf %12, %13 : vector<1x256xf32>
    %15 = math.rsqrt %14 : vector<1x256xf32>
    %c0_6 = arith.constant 0 : index
    %c0_7 = arith.constant 0 : index
    %16 = vector.load %arg3[%c0_6, %c0_7] : memref<96x1xf32, #tpu.memory_space<vmem>>, vector<96x1xf32>
    %c0_8 = arith.constant 0 : index
    %c0_9 = arith.constant 0 : index
    %17 = vector.load %arg4[%c0_8, %c0_9] : memref<96x1xf32, #tpu.memory_space<vmem>>, vector<96x1xf32>
    %18 = vector.broadcast %15 : vector<1x256xf32> to vector<96x256xf32>
    %19 = vector.broadcast %16 : vector<96x1xf32> to vector<96x256xf32>
    %20 = arith.mulf %18, %19 : vector<96x256xf32>
    %21 = arith.mulf %7, %20 : vector<96x256xf32>
    %22 = vector.broadcast %17 : vector<96x1xf32> to vector<96x256xf32>
    %23 = arith.addf %21, %22 : vector<96x256xf32>
    %24 = tpu.transpose %23, [1, 0] : vector<96x256xf32> -> vector<256x96xf32>
    %c0_10 = arith.constant 0 : index
    %c0_11 = arith.constant 0 : index
    %c0_12 = arith.constant 0 : index
    %25 = vector.load %arg5[%c0_10, %c0_11, %c0_12] : memref<1x256x96xf32, #tpu.memory_space<vmem>>, vector<1x256x96xf32>
    %26 = vector.shape_cast %25 : vector<1x256x96xf32> to vector<256x96xf32>
    %27 = vector.shape_cast %24 : vector<256x96xf32> to vector<1x256x96xf32>
    tpu.vector_store %arg5[%c0_10, %c0_11, %c0_12], %27 {strides = array<i32>} : memref<1x256x96xf32, #tpu.memory_space<vmem>>, vector<1x256x96xf32>,
    return
  }
  func.func @transform_0(%arg0: i32, %arg1: i32) -> (i32, i32, i32) {
    %c0_i32 = arith.constant 0 : i32
    %c0_i32_0 = arith.constant 0 : i32
    return %arg0, %c0_i32, %arg1 : i32, i32, i32
  }
  func.func @transform_1(%arg0: i32, %arg1: i32) -> (i32, i32) {
    %c0_i32 = arith.constant 0 : i32
    %c0_i32_0 = arith.constant 0 : i32
    %c0_i32_1 = arith.constant 0 : i32
    return %c0_i32, %c0_i32_0 : i32, i32
  }
  func.func @transform_2(%arg0: i32, %arg1: i32) -> (i32, i32) {
    %c0_i32 = arith.constant 0 : i32
    %c0_i32_0 = arith.constant 0 : i32
    %c0_i32_1 = arith.constant 0 : i32
    return %c0_i32, %c0_i32_0 : i32, i32
  }
  func.func @transform_3(%arg0: i32, %arg1: i32) -> (i32, i32, i32) {
    %c0_i32 = arith.constant 0 : i32
    %c0_i32_0 = arith.constant 0 : i32
    return %arg0, %arg1, %c0_i32 : i32, i32, i32
  }
}

</mosaic_0001>

<bundles_post_ra>
// kernel: tpu_custom_call.1
= control target key start
LH: loop header
LB: loop body
LE: loop exit
PB: predicated region body
PF: predicated region fallthrough
CT: control target
= control target key end

     0   :  { %8 = vsyncpa [#allocation3], 0  ;;  %s1456_s0 = inlined_call_operand.hbm [shape: f32[2,96,256], index: 0, kind: input, shape index: {}]   ;;  %s1457_s1 = inlined_call_operand.vmem [shape: f32[96,1], index: 1, kind: input, shape index: {}]   ;;  %s1458_s2 = inlined_call_operand.vmem [shape: f32[96,1], index: 2, kind: input, shape index: {}]   ;;  %s1459_s3 = inlined_call_operand.vmem [shape: f32[2,256,96], index: 3, kind: output, shape index: {}]  }
   0x1   :  { %10 = vsyncpa [#allocation3 + $0x1], 0  ;;  %s958_s12 = smov 0   ;;  %s960_s13 = smov 0  }
   0x2   :  { %s962_s14 = smov 0   ;;  %s964_s15 = smov 0  }
   0x3   :  { %s966_s16 = smov 0   ;;  %s968_s17 = smov 0  }
   0x4 LB: > { %s775_s18 = sadd.s32 4294967295, %s932_s17   ;;  %s28_s19 = sadd.s32 1, %s928_s16  ;;  %s932_s17 = sphi %s968_s17, %s16_s17   ;;  %s928_s16 = sphi %s966_s16, %s1466_s16   ;;  %s924_s15 = sphi %s964_s15, %s1465_s15   ;;  %s920_s14 = sphi %s962_s14, %s1464_s14   ;;  %s916_s13 = sphi %s960_s13, %s1463_s13   ;;  %s912_s12 = sphi %s958_s12, %s1462_s12  }
   0x5   : > { %p30_p0 = scmp.ge.s32.totalorder %s28_s19, 2  ;;  %s37_s20 = sadd.s32 1, %s920_s14 }
   0x6   : > { %p44_p1 = scmp.ne.s32.totalorder %s920_s14, %s916_s13  ;;  %p45_p2 = scmp.eq.s32.totalorder %s932_s17, 0 }
   0x7   : > { %s1468_s19 = smov (%p30_p0, %s28_s19), 0  ;;  %p50_p4 = scmp.ne.s32.totalorder %s916_s13, %s912_s12 }
   0x8   : > { %p46_p3 = por %p45_p2, %p44_p1  ;;  %s32_s21 = ssub.s32 %s928_s16, %s1468_s19 }
   0x9   : > { %p51_p5 = scmp.eq.s32.totalorder %s775_s18, 0  ;;  %p35_p6 = scmp.eq.s32.totalorder %s32_s21, 0 }
   0xa   : > { %p795_p8 = scmp.lt.s32.totalorder %s932_s17, 2  ;;  %s150_s24 = sand.u32 1, %s920_s14  }
   0xb   : > { %p997_p7 = por %p51_p5, %p50_p4  ;;  %s787_s25 = smul.u32 3072, %s928_s16 }
   0xc   : > { %s1003_s23 = scalar_select %p35_p6, %s920_s14, %s37_s20  }
   0xd   : > { %s786_s26 = smul.u32 192, %s150_s24  ;;  %s162_s29 = scalar_lea.hbm %s1456_s0, %s787_s25 }
   0xe   : > { %p1010_p9 = pnand %p795_p8, %p46_p3  ;;  %s151_s6 = scalar_lea.sflag [#allocation3], %s150_s24 }
   0xf   : > { %s154_s4 = scalar_lea.vmem [#allocation2], %s786_s26  ;;  %s934_s8 = smov [#allocation2]  }
  0x10   : > { %s163_s5 = sshll.u32 %s154_s4, 4  ;;  %p856_p10 = pneg %p1010_p9  ;;  %s164_s5 = int_to_ptr.vmem [resolvable:$true] %s163_s5 }
  0x11   : > { %s867_s7 = scalar_lea.vmem %s164_s5, 3072  ;;  %s872_s9 = sshll.u32 %s934_s8, 4  ;;  %s873_s9 = int_to_ptr.vmem [resolvable:$false] %s872_s9 }
  0x12   : > { %p868_p11 = scmp.ne.s32.totalorder %s164_s5, %s867_s7  ;;  %s874_s10 = scalar_lea.vmem %s873_s9, 6144 }
  0x13   : > { %p875_p0 = scmp.lt.s32.totalorder %s164_s5, %s873_s9  ;;  %p876_p1 = scmp.lt.s32.totalorder %s874_s10, %s867_s7 }
  0x14   : > { %p870_p12 = pnand %p868_p11, %p856_p10 }
  0x15   : > { %p877_p2 = por %p876_p1, %p875_p0 }
  0x16   : > { %p871_p13 = pneg %p870_p12 }
  0x18   : > { %p878_p3 = pnand %p877_p2, %p871_p13 }
  0x1a   : > { %881 = shalt.err (!%p878_p3)
}
  0x1b   : > { %s935_s11 = smov 256   ;;  %s936_s12 = smov 16  }
  0x1c   : > { %794 = dma.hbm_to_vmem [thread:$0]  (!%p1010_p9), %s162_s29, 3072, %s164_s5, %s151_s6, %s935_s11, %s935_s11, %s936_s12  }
  0x1d   : > { %p780_p4 = scmp.ge.s32.totalorder %s932_s17, 1  ;;  %p171_p5 = scmp.lt.s32.totalorder %s932_s17, 3 }
  0x1f   : > { %p172_p6 = pnand %p780_p4, %p171_p5 }
  0x20   : > { %s177_s18 = sand.u32 (!%p172_p6), 1, %s916_s13  }
  0x21   : > { %175 = sbr.rel (%p172_p6) target bundleno = 361 (0x169), region = 32  ;;  %s178_s21 = scalar_lea.sflag (!%p172_p6), [#allocation3], %s177_s18 }
  0x22   : > { %s788_s20 = smul.u32 (!%p172_p6), 192, %s177_s18 }
  0x24   : > { %s1021_s24 = scalar_lea.vmem (!%p172_p6), [#allocation2], %s788_s20 }
  0x26   : > { %907 = dma.done.wait (%p997_p7), %s178_s21, 3072  }
  0x27   : > { %909 = vsyncadd (%p997_p7), %s178_s21, 4294964224  ;;  %v937_v0 = vmov 0   ;;  %v369_v1 = vld [vmem:[%s1457_s1 + $0x10] sm:$0xff]  ;;  %v367_v2 = vld [vmem:[%s1457_s1] sm:$0xff]  ;;  %p210_p7 = scmp.lt.s32.totalorder %s924_s15, 1  ;;  %vm647_vm0 = vcmask 785408  }
  0x28   : > { %849 = vset.pattern.permute.xlu1 %v937_v0  ;;  %848 = vset.pattern.permute.xlu0 %v937_v0  ;;  %v370_v3 = vld [vmem:[%s1457_s1 + $0x18] sm:$0xff]  ;;  %v368_v4 = vld [vmem:[%s1457_s1 + $0x8] sm:$0xff]  ;;  %v379_v6 = vld [vmem:[%s1458_s2] sm:$0xff] }
  0x29   : > { %403 = vperm.xlu1 %849, %v369_v1   ;;  %393 = vperm.xlu0 %848, %v367_v2   ;;  %v380_v5 = vld [vmem:[%s1458_s2 + $0x8] sm:$0xff]  ;;  %v1046_v7 = vld [vmem:[%s1021_s24] sm:$0xff]  ;;  %v1052_v9 = vld [vmem:[%s1021_s24 + $0x10] sm:$0xff]  ;;  %s1470_s15 = smov (!%p210_p7, %s924_s15), 1 }
  0x2a   : > { %v1049_v8 = vld [vmem:[%s1021_s24 + $0x8] sm:$0xff]  ;;  %v1055_v10 = vld [vmem:[%s1021_s24 + $0x18] sm:$0xff]  ;;  %v1058_v11 = vld [vmem:[%s1021_s24 + $0x20] sm:$0xff]  ;;  %v243_v13 = vadd.f32 %v1052_v9, %v1046_v7  ;;  %s785_s6 = sshll.u32 %s1470_s15, 8 }
  0x2b   : > { %v1061_v12 = vld [vmem:[%s1021_s24 + $0x28] sm:$0xff]  ;;  %v381_v14 = vld [vmem:[%s1458_s2 + $0x10] sm:$0xff]  ;;  %v371_v15 = vld [vmem:[%s1457_s1 + $0x20] sm:$0xff]  ;;  %v260_v17 = vadd.f32 %v1055_v10, %v1049_v8  ;;  %s1372_s9 = scalar_lea.vmem %s1459_s3, %s785_s6 }
  0x2c   : > { %v1072_v16 = vld [vmem:[%s1021_s24 + $0x30] sm:$0xff]  ;;  %v1077_v18 = vld [vmem:[%s1021_s24 + $0x38] sm:$0xff]  ;;  %v244_v19 = vadd.f32 %v243_v13, %v1058_v11  ;;  %v1081_v20 = vld [vmem:[%s1021_s24 + $0x40] sm:$0xff] }
  0x2d   : > { %408 = vperm.xlu1 %849, %v370_v3   ;;  %398 = vperm.xlu0 %848, %v368_v4   ;;  %v261_v21 = vadd.f32 %v260_v17, %v1061_v12  ;;  %v1085_v22 = vld [vmem:[%s1021_s24 + $0x48] sm:$0xff]  ;;  %v382_v24 = vld [vmem:[%s1458_s2 + $0x18] sm:$0xff]  ;;  %v1095_v26 = vld [vmem:[%s1021_s24 + $0x50] sm:$0xff] }
  0x2e   : > { %v245_v23 = vadd.f32 %v244_v19, %v1072_v16  ;;  %v372_v25 = vld [vmem:[%s1457_s1 + $0x28] sm:$0xff]  ;;  %v1099_v28 = vld [vmem:[%s1021_s24 + $0x58] sm:$0xff]  ;;  %v1103_v30 = vld [vmem:[%s1021_s24 + $0x60] sm:$0xff] }
  0x2f   : > { %v262_v27 = vadd.f32 %v261_v21, %v1077_v18  ;;  %v1107_v32 = vld [vmem:[%s1021_s24 + $0x68] sm:$0xff]  ;;  %v383_v34 = vld [vmem:[%s1458_s2 + $0x20] sm:$0xff]  ;;  %v373_v35 = vld [vmem:[%s1457_s1 + $0x30] sm:$0xff] }
  0x30   : > { %v246_v29 = vadd.f32 %v245_v23, %v1081_v20  ;;  %v1117_v36 = vld [vmem:[%s1021_s24 + $0x70] sm:$0xff]  ;;  %v1121_v38 = vld [vmem:[%s1021_s24 + $0x78] sm:$0xff]  ;;  %v1125_v40 = vld [vmem:[%s1021_s24 + $0x80] sm:$0xff] }
  0x31   : > { %506 = vperm.xlu1 %849, %v380_v5   ;;  %501 = vperm.xlu0 %848, %v379_v6   ;;  %v263_v31 = vadd.f32 %v262_v27, %v1085_v22  ;;  %v1129_v42 = vld [vmem:[%s1021_s24 + $0x88] sm:$0xff]  ;;  %v374_v45 = vld [vmem:[%s1457_s1 + $0x38] sm:$0xff]  ;;  %v1139_v46 = vld [vmem:[%s1021_s24 + $0x90] sm:$0xff] }
  0x32   : > { %v247_v33 = vadd.f32 %v246_v29, %v1095_v26  ;;  %v384_v44 = vld [vmem:[%s1458_s2 + $0x28] sm:$0xff]  ;;  %v1143_v48 = vld [vmem:[%s1021_s24 + $0x98] sm:$0xff]  ;;  %v1147_v50 = vld [vmem:[%s1021_s24 + $0xa0] sm:$0xff] }
  0x33   : > { %v264_v37 = vadd.f32 %v263_v31, %v1099_v28  ;;  %v1151_v52 = vld [vmem:[%s1021_s24 + $0xa8] sm:$0xff]  ;;  %v385_v54 = vld [vmem:[%s1458_s2 + $0x30] sm:$0xff]  ;;  %v375_v55 = vld [vmem:[%s1457_s1 + $0x40] sm:$0xff] }
  0x34   : > { %v248_v39 = vadd.f32 %v247_v33, %v1103_v30  ;;  %v1161_v56 = vld [vmem:[%s1021_s24 + $0xb0] sm:$0xff]  ;;  %v1165_v58 = vld [vmem:[%s1021_s24 + $0xb8] sm:$0xff]  ;;  %v376_v63 = vld [vmem:[%s1457_s1 + $0x48] sm:$0xff] }
  0x35   : > { %511 = vperm.xlu1 %849, %v381_v14   ;;  %413 = vperm.xlu0 %848, %v371_v15   ;;  %v265_v41 = vadd.f32 %v264_v37, %v1107_v32  ;;  %v386_v62 = vld [vmem:[%s1458_s2 + $0x38] sm:$0xff]  ;;  %v387_v4 = vld [vmem:[%s1458_s2 + $0x40] sm:$0xff]  ;;  %v377_v5 = vld [vmem:[%s1457_s1 + $0x50] sm:$0xff] }
  0x36   : > { %v249_v43 = vadd.f32 %v248_v39, %v1117_v36  ;;  %v388_v17 = vld [vmem:[%s1458_s2 + $0x48] sm:$0xff]  ;;  %v378_v19 = vld [vmem:[%s1457_s1 + $0x58] sm:$0xff]  ;;  %v389_v29 = vld [vmem:[%s1458_s2 + $0x50] sm:$0xff] }
  0x37   : > { %v266_v47 = vadd.f32 %v265_v41, %v1121_v38  ;;  %v390_v27 = vld [vmem:[%s1458_s2 + $0x58] sm:$0xff] }
  0x38   : > { %v250_v49 = vadd.f32 %v249_v43, %v1125_v40 }
  0x39   : > { %516 = vperm.xlu1 %849, %v382_v24   ;;  %418 = vperm.xlu0 %848, %v372_v25   ;;  %v267_v51 = vadd.f32 %v266_v47, %v1129_v42 }
  0x3a   : > { %v251_v53 = vadd.f32 %v250_v49, %v1139_v46 }
  0x3b   : > { %v268_v57 = vadd.f32 %v267_v51, %v1143_v48 }
  0x3c   : > { %v252_v59 = vadd.f32 %v251_v53, %v1147_v50 }
  0x3d   : > { %521 = vperm.xlu1 %849, %v383_v34   ;;  %423 = vperm.xlu0 %848, %v373_v35   ;;  %v269_v60 = vadd.f32 %v268_v57, %v1151_v52 }
  0x3e   : > { %v253_v61 = vadd.f32 %v252_v59, %v1161_v56 }
  0x3f   : > { %v270_v0 = vadd.f32 %v269_v60, %v1165_v58 }
  0x40   : > { %v254_v1 = vrot.slane %v253_v61, 4 }
  0x41   : > { %526 = vperm.xlu1 %849, %v384_v44   ;;  %428 = vperm.xlu0 %848, %v374_v45   ;;  %v271_v2 = vrot.slane %v270_v0, 4 }
  0x42   : > { %v255_v3 = vadd.f32 %v254_v1, %v253_v61 }
  0x43   : > { %v272_v6 = vadd.f32 %v271_v2, %v270_v0 }
  0x44   : > { %v256_v13 = vrot.slane %v255_v3, 2 }
  0x45   : > { %531 = vperm.xlu1 %849, %v385_v54   ;;  %433 = vperm.xlu0 %848, %v375_v55   ;;  %v273_v14 = vrot.slane %v272_v6, 2 }
  0x46   : > { %v257_v15 = vadd.f32 %v256_v13, %v255_v3 }
  0x47   : > { %v274_v21 = vadd.f32 %v273_v14, %v272_v6 }
  0x48   : > { %v258_v23 = vrot.slane %v257_v15, 1 }
  0x49   : > { %536 = vperm.xlu1 %849, %v386_v62   ;;  %438 = vperm.xlu0 %848, %v376_v63   ;;  %v275_v24 = vrot.slane %v274_v21, 1 }
  0x4a   : > { %v259_v25 = vadd.f32 %v258_v23, %v257_v15 }
  0x4b   : > { %v276_v31 = vadd.f32 %v275_v24, %v274_v21 }
  0x4c   : > { %v277_v33 = vmul.f32 0.010416667, %v259_v25 }
  0x4d   : > { %541 = vperm.xlu1 %849, %v387_v4   ;;  %443 = vperm.xlu0 %848, %v377_v5   ;;  %v278_v34 = vmul.f32 0.010416667, %v276_v31 }
  0x4e   : > { %v1196_v35 = vsub.f32 %v1046_v7, %v277_v33  ;;  %v1202_v39 = vsub.f32 %v1052_v9, %v277_v33  ;;  %v1208_v43 = vsub.f32 %v1058_v11, %v277_v33  ;;  %v1214_v45 = vsub.f32 %v1072_v16, %v277_v33 }
  0x4f   : > { %v1199_v37 = vsub.f32 %v1049_v8, %v278_v34  ;;  %v1205_v41 = vsub.f32 %v1055_v10, %v278_v34  ;;  %v1211_v44 = vsub.f32 %v1061_v12, %v278_v34  ;;  %v1217_v7 = vsub.f32 %v1077_v18, %v278_v34 }
  0x50   : > { %v303_v8 = vmul.f32 %v1196_v35, %v1196_v35  ;;  %v305_v10 = vmul.f32 %v1202_v39, %v1202_v39  ;;  %v1228_v12 = vsub.f32 %v1081_v20, %v277_v33  ;;  %v1231_v16 = vsub.f32 %v1085_v22, %v278_v34 }
  0x51   : > { %546 = vperm.xlu1 %849, %v388_v17   ;;  %448 = vperm.xlu0 %848, %v378_v19   ;;  %v304_v9 = vmul.f32 %v1199_v37, %v1199_v37  ;;  %v306_v11 = vmul.f32 %v1205_v41, %v1205_v41  ;;  %v307_v18 = vmul.f32 %v1208_v43, %v1208_v43 }
  0x52   : > { %v308_v47 = vmul.f32 %v1211_v44, %v1211_v44  ;;  %v1238_v49 = vsub.f32 %v1095_v26, %v277_v33  ;;  %v1241_v51 = vsub.f32 %v1099_v28, %v278_v34  ;;  %v309_v53 = vmul.f32 %v1214_v45, %v1214_v45 }
  0x53   : > { %v310_v20 = vmul.f32 %v1217_v7, %v1217_v7  ;;  %v327_v22 = vadd.f32 %v305_v10, %v303_v8  ;;  %v344_v54 = vadd.f32 %v306_v11, %v304_v9  ;;  %v1248_v55 = vsub.f32 %v1103_v30, %v277_v33 }
  0x54   : > { %v1251_v57 = vsub.f32 %v1107_v32, %v278_v34  ;;  %v311_v26 = vmul.f32 %v1228_v12, %v1228_v12  ;;  %v312_v28 = vmul.f32 %v1231_v16, %v1231_v16  ;;  %v1258_v61 = vsub.f32 %v1117_v36, %v277_v33 }
  0x55   : > { %556 = vperm.xlu1 %849, %v390_v27   ;;  %551 = vperm.xlu0 %848, %v389_v29   ;;  %v328_v59 = vadd.f32 %v327_v22, %v307_v18  ;;  %v345_v60 = vadd.f32 %v344_v54, %v308_v47  ;;  %v1261_v62 = vsub.f32 %v1121_v38, %v278_v34 }
  0x56   : > { %v313_v30 = vmul.f32 %v1238_v49, %v1238_v49  ;;  %v314_v32 = vmul.f32 %v1241_v51, %v1241_v51  ;;  %v1268_v1 = vsub.f32 %v1125_v40, %v277_v33  ;;  %v1271_v2 = vsub.f32 %v1129_v42, %v278_v34 }
  0x57   : > { %v329_v63 = vadd.f32 %v328_v59, %v309_v53  ;;  %v346_v0 = vadd.f32 %v345_v60, %v310_v20  ;;  %v315_v36 = vmul.f32 %v1248_v55, %v1248_v55  ;;  %v316_v38 = vmul.f32 %v1251_v57, %v1251_v57 }
  0x58   : > { %v1278_v5 = vsub.f32 %v1139_v46, %v277_v33  ;;  %v1281_v6 = vsub.f32 %v1143_v48, %v278_v34  ;;  %v317_v40 = vmul.f32 %v1258_v61, %v1258_v61  ;;  %v318_v42 = vmul.f32 %v1261_v62, %v1261_v62 }
  0x59   : > { %v330_v3 = vadd.f32 %v329_v63, %v311_v26  ;;  %v347_v4 = vadd.f32 %v346_v0, %v312_v28  ;;  %v1288_v15 = vsub.f32 %v1147_v50, %v277_v33  ;;  %v1291_v17 = vsub.f32 %v1151_v52, %v278_v34 }
  0x5a   : > { %v319_v46 = vmul.f32 %v1268_v1, %v1268_v1  ;;  %v320_v48 = vmul.f32 %v1271_v2, %v1271_v2  ;;  %v1298_v23 = vsub.f32 %v1161_v56, %v277_v33  ;;  %v1301_v24 = vsub.f32 %v1165_v58, %v278_v34 }
  0x5b   : > { %v331_v13 = vadd.f32 %v330_v3, %v313_v30  ;;  %v348_v14 = vadd.f32 %v347_v4, %v314_v32  ;;  %v321_v50 = vmul.f32 %v1278_v5, %v1278_v5  ;;  %v322_v52 = vmul.f32 %v1281_v6, %v1281_v6 }
  0x5c   : > { %v323_v29 = vmul.f32 %v1288_v15, %v1288_v15  ;;  %v324_v31 = vmul.f32 %v1291_v17, %v1291_v17  ;;  %v325_v58 = vmul.f32 %v1298_v23, %v1298_v23  ;;  %v326_v33 = vmul.f32 %v1301_v24, %v1301_v24 }
  0x5d   : > { %v332_v19 = vadd.f32 %v331_v13, %v315_v36  ;;  %v349_v21 = vadd.f32 %v348_v14, %v316_v38 }
  0x5f   : > { %v333_v25 = vadd.f32 %v332_v19, %v317_v40  ;;  %v350_v27 = vadd.f32 %v349_v21, %v318_v42 }
  0x61   : > { %v334_v8 = vadd.f32 %v333_v25, %v319_v46  ;;  %v351_v56 = vadd.f32 %v350_v27, %v320_v48 }
  0x63   : > { %v335_v34 = vadd.f32 %v334_v8, %v321_v50  ;;  %v352_v9 = vadd.f32 %v351_v56, %v322_v52 }
  0x65   : > { %v336_v10 = vadd.f32 %v335_v34, %v323_v29  ;;  %v353_v11 = vadd.f32 %v352_v9, %v324_v31 }
  0x67   : > { %v337_v18 = vadd.f32 %v336_v10, %v325_v58  ;;  %v354_v47 = vadd.f32 %v353_v11, %v326_v33 }
  0x69   : > { %v338_v53 = vrot.slane %v337_v18, 4  ;;  %v355_v20 = vrot.slane %v354_v47, 4 }
  0x6b   : > { %v339_v22 = vadd.f32 %v338_v53, %v337_v18  ;;  %v356_v54 = vadd.f32 %v355_v20, %v354_v47 }
  0x6d   : > { %v340_v26 = vrot.slane %v339_v22, 2  ;;  %v357_v28 = vrot.slane %v356_v54, 2 }
  0x6f   : > { %v341_v59 = vadd.f32 %v340_v26, %v339_v22  ;;  %v358_v60 = vadd.f32 %v357_v28, %v356_v54 }
  0x71   : > { %v342_v30 = vrot.slane %v341_v59, 1  ;;  %v359_v32 = vrot.slane %v358_v60, 1 }
  0x73   : > { %v343_v63 = vadd.f32 %v342_v30, %v341_v59  ;;  %v360_v0 = vadd.f32 %v359_v32, %v358_v60 }
  0x75   : > { %v361_v36 = vmul.f32 0.010416667, %v343_v63  ;;  %v362_v38 = vmul.f32 0.010416667, %v360_v0 }
  0x77   : > { %v363_v3 = vadd.f32 1e-05, %v361_v36  ;;  %v364_v4 = vadd.f32 1e-05, %v362_v38 }
  0x79   : > { %850 = vrsqrt.f32 %v363_v3 }
  0x7a   : > { %852 = vrsqrt.f32 %v364_v4 }
  0x86   : > { %v1315_v40 = vpop.eup %850 }
  0x87   : > { %v1317_v42 = vpop.eup %852 }
  0xa4   : > { %v404_v13 = vpop.permute.xlu1 %403  ;;  %v394_v14 = vpop.permute.xlu0 %393 }
  0xa5   : > { %v451_v46 = vmul.f32 %v1315_v40, %v394_v14  ;;  %v452_v48 = vmul.f32 %v1317_v42, %v394_v14  ;;  %v455_v34 = vmul.f32 %v1315_v40, %v404_v13  ;;  %v456_v9 = vmul.f32 %v1317_v42, %v404_v13 }
  0xa7   : > { %v475_v25 = vmul.f32 %v451_v46, %v1196_v35  ;;  %v476_v27 = vmul.f32 %v452_v48, %v1199_v37 }
  0xa8   : > { %v409_v19 = vpop.permute.xlu1 %408  ;;  %v399_v21 = vpop.permute.xlu0 %398 }
  0xa9   : > { %v453_v50 = vmul.f32 %v1315_v40, %v399_v21  ;;  %v454_v52 = vmul.f32 %v1317_v42, %v399_v21  ;;  %v457_v37 = vmul.f32 %v1315_v40, %v409_v19  ;;  %v458_v47 = vmul.f32 %v1317_v42, %v409_v19 }
  0xab   : > { %v477_v8 = vmul.f32 %v453_v50, %v1202_v39  ;;  %v478_v56 = vmul.f32 %v454_v52, %v1205_v41  ;;  %v479_v39 = vmul.f32 %v455_v34, %v1208_v43  ;;  %v480_v41 = vmul.f32 %v456_v9, %v1211_v44 }
  0xac   : > { %v507_v29 = vpop.permute.xlu1 %506  ;;  %v502_v31 = vpop.permute.xlu0 %501  ;;  %v481_v26 = vmul.f32 %v457_v37, %v1214_v45  ;;  %v482_v60 = vmul.f32 %v458_v47, %v1217_v7 }
  0xad   : > { %v559_v58 = vadd.f32 %v502_v31, %v475_v25  ;;  %v560_v33 = vadd.f32 %v502_v31, %v476_v27  ;;  %v561_v18 = vadd.f32 %v507_v29, %v477_v8  ;;  %v562_v35 = vadd.f32 %v507_v29, %v478_v56 }
  0xaf   : > { %615 = vxpose.xlu1.b32.start [1/12] (short) %v560_v33, 128  ;;  %583 = vxpose.xlu0.b32.start [1/12] (short) %v559_v58, 128 }
  0xb0   : > { %v512_v10 = vpop.permute.xlu1 %511  ;;  %v414_v11 = vpop.permute.xlu0 %413 }
  0xb1   : > { %v563_v22 = vadd.f32 %v512_v10, %v479_v39  ;;  %v564_v54 = vadd.f32 %v512_v10, %v480_v41  ;;  %v459_v28 = vmul.f32 %v1315_v40, %v414_v11  ;;  %v460_v59 = vmul.f32 %v1317_v42, %v414_v11 }
  0xb3   : > { %616 = vxpose.xlu1.b32.cont [2/12] (short) %v562_v35, 128  ;;  %584 = vxpose.xlu0.b32.cont [2/12] (short) %v561_v18, 128  ;;  %v483_v36 = vmul.f32 %v459_v28, %v1228_v12  ;;  %v484_v45 = vmul.f32 %v460_v59, %v1231_v16 }
  0xb4   : > { %v517_v53 = vpop.permute.xlu1 %516  ;;  %v419_v20 = vpop.permute.xlu0 %418 }
  0xb5   : > { %v565_v32 = vadd.f32 %v517_v53, %v481_v26  ;;  %v566_v44 = vadd.f32 %v517_v53, %v482_v60  ;;  %v461_v63 = vmul.f32 %v1315_v40, %v419_v20  ;;  %v462_v0 = vmul.f32 %v1317_v42, %v419_v20 }
  0xb7   : > { %617 = vxpose.xlu1.b32.cont [3/12] (short) %v564_v54, 128  ;;  %585 = vxpose.xlu0.b32.cont [3/12] (short) %v563_v22, 128  ;;  %v485_v13 = vmul.f32 %v461_v63, %v1238_v49  ;;  %v486_v48 = vmul.f32 %v462_v0, %v1241_v51 }
  0xb8   : > { %v522_v30 = vpop.permute.xlu1 %521  ;;  %v424_v43 = vpop.permute.xlu0 %423 }
  0xb9   : > { %v567_v4 = vadd.f32 %v522_v30, %v483_v36  ;;  %v568_v7 = vadd.f32 %v522_v30, %v484_v45  ;;  %v463_v14 = vmul.f32 %v1315_v40, %v424_v43  ;;  %v464_v46 = vmul.f32 %v1317_v42, %v424_v43 }
  0xbb   : > { %618 = vxpose.xlu1.b32.cont [4/12] (short) %v566_v44, 128  ;;  %586 = vxpose.xlu0.b32.cont [4/12] (short) %v565_v32, 128  ;;  %v487_v25 = vmul.f32 %v463_v14, %v1248_v55  ;;  %v488_v49 = vmul.f32 %v464_v46, %v1251_v57 }
  0xbc   : > { %v527_v38 = vpop.permute.xlu1 %526  ;;  %v429_v3 = vpop.permute.xlu0 %428 }
  0xbd   : > { %v569_v21 = vadd.f32 %v527_v38, %v485_v13  ;;  %v570_v16 = vadd.f32 %v527_v38, %v486_v48  ;;  %v465_v50 = vmul.f32 %v1315_v40, %v429_v3  ;;  %v466_v52 = vmul.f32 %v1317_v42, %v429_v3 }
  0xbf   : > { %619 = vxpose.xlu1.b32.cont [5/12] (short) %v568_v7, 128  ;;  %587 = vxpose.xlu0.b32.cont [5/12] (short) %v567_v4, 128  ;;  %v489_v8 = vmul.f32 %v465_v50, %v1258_v61  ;;  %v490_v33 = vmul.f32 %v466_v52, %v1261_v62 }
  0xc0   : > { %v532_v19 = vpop.permute.xlu1 %531  ;;  %v434_v12 = vpop.permute.xlu0 %433 }
  0xc1   : > { %v571_v31 = vadd.f32 %v532_v19, %v487_v25  ;;  %v572_v51 = vadd.f32 %v532_v19, %v488_v49  ;;  %v467_v56 = vmul.f32 %v1315_v40, %v434_v12  ;;  %v468_v58 = vmul.f32 %v1317_v42, %v434_v12 }
  0xc3   : > { %620 = vxpose.xlu1.b32.cont [6/12] (short) %v570_v16, 128  ;;  %588 = vxpose.xlu0.b32.cont [6/12] (short) %v569_v21, 128  ;;  %v491_v18 = vmul.f32 %v467_v56, %v1268_v1  ;;  %v492_v61 = vmul.f32 %v468_v58, %v1271_v2 }
  0xc4   : > { %v537_v27 = vpop.permute.xlu1 %536  ;;  %v439_v29 = vpop.permute.xlu0 %438 }
  0xc5   : > { %v573_v9 = vadd.f32 %v537_v27, %v489_v8  ;;  %v574_v57 = vadd.f32 %v537_v27, %v490_v33  ;;  %v469_v10 = vmul.f32 %v1315_v40, %v439_v29  ;;  %v470_v11 = vmul.f32 %v1317_v42, %v439_v29 }
  0xc7   : > { %621 = vxpose.xlu1.b32.cont [7/12] (short) %v572_v51, 128  ;;  %589 = vxpose.xlu0.b32.cont [7/12] (short) %v571_v31, 128  ;;  %v493_v39 = vmul.f32 %v469_v10, %v1278_v5  ;;  %v494_v20 = vmul.f32 %v470_v11, %v1281_v6 }
  0xc8   : > { %v542_v34 = vpop.permute.xlu1 %541  ;;  %v444_v55 = vpop.permute.xlu0 %443 }
  0xc9   : > { %v575_v37 = vadd.f32 %v542_v34, %v491_v18  ;;  %v576_v47 = vadd.f32 %v542_v34, %v492_v61  ;;  %v471_v41 = vmul.f32 %v1315_v40, %v444_v55  ;;  %v472_v53 = vmul.f32 %v1317_v42, %v444_v55 }
  0xcb   : > { %622 = vxpose.xlu1.b32.cont [8/12] (short) %v574_v57, 128  ;;  %590 = vxpose.xlu0.b32.cont [8/12] (short) %v573_v9, 128  ;;  %v495_v28 = vmul.f32 %v471_v41, %v1288_v15  ;;  %v496_v5 = vmul.f32 %v472_v53, %v1291_v17 }
  0xcc   : > { %v449_v35 = vpop.permute.xlu0 %448  ;;  %v547_v62 = vpop.permute.xlu1 %546 }
  0xcd   : > { %v577_v22 = vadd.f32 %v547_v62, %v493_v39  ;;  %v578_v1 = vadd.f32 %v547_v62, %v494_v20  ;;  %v473_v2 = vmul.f32 %v1315_v40, %v449_v35  ;;  %v474_v54 = vmul.f32 %v1317_v42, %v449_v35 }
  0xcf   : > { %623 = vxpose.xlu1.b32.cont [9/12] (short) %v576_v47, 128  ;;  %591 = vxpose.xlu0.b32.cont [9/12] (short) %v575_v37, 128  ;;  %v497_v59 = vmul.f32 %v473_v2, %v1298_v23  ;;  %v498_v6 = vmul.f32 %v474_v54, %v1301_v24 }
  0xd0   : > { %v552_v26 = vpop.permute.xlu0 %551  ;;  %v557_v43 = vpop.permute.xlu1 %556 }
  0xd1   : > { %v579_v60 = vadd.f32 %v552_v26, %v495_v28  ;;  %v580_v30 = vadd.f32 %v552_v26, %v496_v5  ;;  %v581_v40 = vadd.f32 %v557_v43, %v497_v59  ;;  %v582_v42 = vadd.f32 %v557_v43, %v498_v6 }
  0xd3   : > { %624 = vxpose.xlu1.b32.cont [10/12] (short) %v578_v1, 128  ;;  %592 = vxpose.xlu0.b32.cont [10/12] (short) %v577_v22, 128 }
  0xd7   : > { %625 = vxpose.xlu1.b32.cont [11/12] (short) %v580_v30, 128  ;;  %593 = vxpose.xlu0.b32.cont [11/12] (short) %v579_v60, 128 }
  0xdb   : > { %626 = vxpose.xlu1.b32.end [12/12] (short) %v582_v42, 128  ;;  %594 = vxpose.xlu0.b32.end [12/12] (short) %v581_v40, 128 }
 0x12b   : > { %v631_v15 = vpop.trf.xlu1  ;;  %v599_v17 = vpop.trf.xlu0 }
 0x12c   : > { %664 = vst.msk [vmem:[%s1372_s9 + $0x80] sm:$0xff] %vm647_vm0, %v631_v15  ;;  %648 = vst.msk [vmem:[%s1372_s9] sm:$0xff] %vm647_vm0, %v599_v17 }
 0x12f   : > { %v632_v23 = vpop.trf.xlu1  ;;  %v600_v24 = vpop.trf.xlu0 }
 0x130   : > { %665 = vst.msk [vmem:[%s1372_s9 + $0x88] sm:$0xff] %vm647_vm0, %v632_v23  ;;  %649 = vst.msk [vmem:[%s1372_s9 + $0x8] sm:$0xff] %vm647_vm0, %v600_v24 }
 0x133   : > { %v633_v32 = vpop.trf.xlu1  ;;  %v601_v44 = vpop.trf.xlu0 }
 0x134   : > { %666 = vst.msk [vmem:[%s1372_s9 + $0x90] sm:$0xff] %vm647_vm0, %v633_v32  ;;  %650 = vst.msk [vmem:[%s1372_s9 + $0x10] sm:$0xff] %vm647_vm0, %v601_v44 }
 0x137   : > { %v634_v63 = vpop.trf.xlu1  ;;  %v602_v0 = vpop.trf.xlu0 }
 0x138   : > { %667 = vst.msk [vmem:[%s1372_s9 + $0x98] sm:$0xff] %vm647_vm0, %v634_v63  ;;  %651 = vst.msk [vmem:[%s1372_s9 + $0x18] sm:$0xff] %vm647_vm0, %v602_v0 }
 0x13b   : > { %v635_v36 = vpop.trf.xlu1  ;;  %v603_v45 = vpop.trf.xlu0 }
 0x13c   : > { %668 = vst.msk [vmem:[%s1372_s9 + $0xa0] sm:$0xff] %vm647_vm0, %v635_v36  ;;  %652 = vst.msk [vmem:[%s1372_s9 + $0x20] sm:$0xff] %vm647_vm0, %v603_v45 }
 0x13f   : > { %v636_v38 = vpop.trf.xlu1  ;;  %v604_v3 = vpop.trf.xlu0 }
 0x140   : > { %669 = vst.msk [vmem:[%s1372_s9 + $0xa8] sm:$0xff] %vm647_vm0, %v636_v38  ;;  %653 = vst.msk [vmem:[%s1372_s9 + $0x28] sm:$0xff] %vm647_vm0, %v604_v3 }
 0x143   : > { %v637_v4 = vpop.trf.xlu1  ;;  %v605_v7 = vpop.trf.xlu0 }
 0x144   : > { %670 = vst.msk [vmem:[%s1372_s9 + $0xb0] sm:$0xff] %vm647_vm0, %v637_v4  ;;  %654 = vst.msk [vmem:[%s1372_s9 + $0x30] sm:$0xff] %vm647_vm0, %v605_v7 }
 0x147   : > { %v638_v13 = vpop.trf.xlu1  ;;  %v606_v14 = vpop.trf.xlu0 }
 0x148   : > { %671 = vst.msk [vmem:[%s1372_s9 + $0xb8] sm:$0xff] %vm647_vm0, %v638_v13  ;;  %655 = vst.msk [vmem:[%s1372_s9 + $0x38] sm:$0xff] %vm647_vm0, %v606_v14 }
 0x14b   : > { %v639_v46 = vpop.trf.xlu1  ;;  %v607_v48 = vpop.trf.xlu0 }
 0x14c   : > { %672 = vst.msk [vmem:[%s1372_s9 + $0xc0] sm:$0xff] %vm647_vm0, %v639_v46  ;;  %656 = vst.msk [vmem:[%s1372_s9 + $0x40] sm:$0xff] %vm647_vm0, %v607_v48 }
 0x14f   : > { %v640_v19 = vpop.trf.xlu1  ;;  %v608_v12 = vpop.trf.xlu0 }
 0x150   : > { %673 = vst.msk [vmem:[%s1372_s9 + $0xc8] sm:$0xff] %vm647_vm0, %v640_v19  ;;  %657 = vst.msk [vmem:[%s1372_s9 + $0x48] sm:$0xff] %vm647_vm0, %v608_v12 }
 0x153   : > { %v641_v21 = vpop.trf.xlu1  ;;  %v609_v16 = vpop.trf.xlu0 }
 0x154   : > { %674 = vst.msk [vmem:[%s1372_s9 + $0xd0] sm:$0xff] %vm647_vm0, %v641_v21  ;;  %658 = vst.msk [vmem:[%s1372_s9 + $0x50] sm:$0xff] %vm647_vm0, %v609_v16 }
 0x157   : > { %v642_v50 = vpop.trf.xlu1  ;;  %v610_v52 = vpop.trf.xlu0 }
 0x158   : > { %675 = vst.msk [vmem:[%s1372_s9 + $0xd8] sm:$0xff] %vm647_vm0, %v642_v50  ;;  %659 = vst.msk [vmem:[%s1372_s9 + $0x58] sm:$0xff] %vm647_vm0, %v610_v52 }
 0x15b   : > { %v643_v25 = vpop.trf.xlu1  ;;  %v611_v49 = vpop.trf.xlu0 }
 0x15c   : > { %676 = vst.msk [vmem:[%s1372_s9 + $0xe0] sm:$0xff] %vm647_vm0, %v643_v25  ;;  %660 = vst.msk [vmem:[%s1372_s9 + $0x60] sm:$0xff] %vm647_vm0, %v611_v49 }
 0x15f   : > { %v644_v27 = vpop.trf.xlu1  ;;  %v612_v29 = vpop.trf.xlu0 }
 0x160   : > { %677 = vst.msk [vmem:[%s1372_s9 + $0xe8] sm:$0xff] %vm647_vm0, %v644_v27  ;;  %661 = vst.msk [vmem:[%s1372_s9 + $0x68] sm:$0xff] %vm647_vm0, %v612_v29 }
 0x163   : > { %v645_v31 = vpop.trf.xlu1  ;;  %v613_v51 = vpop.trf.xlu0 }
 0x164   : > { %678 = vst.msk [vmem:[%s1372_s9 + $0xf0] sm:$0xff] %vm647_vm0, %v645_v31  ;;  %662 = vst.msk [vmem:[%s1372_s9 + $0x70] sm:$0xff] %vm647_vm0, %v613_v51 }
 0x167   : > { %v646_v8 = vpop.trf.xlu1  ;;  %v614_v56 = vpop.trf.xlu0 }
 0x168   : > { %679 = vst.msk [vmem:[%s1372_s9 + $0xf8] sm:$0xff] %vm647_vm0, %v646_v8  ;;  %663 = vst.msk [vmem:[%s1372_s9 + $0x78] sm:$0xff] %vm647_vm0, %v614_v56 }
 0x169 PF: > { %s16_s17 = sadd.s32 1, %s932_s17   ;;  %s1462_s12 = smov %s916_s13 }
 0x16a   : > { %p13_p8 = scmp.ge.s32.totalorder %s16_s17, 4   ;;  %s1463_s13 = smov %s920_s14 }
 0x16b   : > { %s1464_s14 = smov %s1003_s23  ;;  %s1465_s15 = smov %s928_s16 }
 0x16c   : > { %s1466_s16 = smov %s1468_s19  ;;  %15 = sbr.rel (!%p13_p8) target bundleno = 4 (0x4), region = 72 }
 0x171   :  { %710 = vsyncpa [#allocation3], 1 }
 0x172   :  { %712 = vsyncpa [#allocation3 + $0x1], 1 }

</bundles_post_ra>
